<compile_context>
chip_gen: v7x
topology: tpu7x:2x2x1
jax: 0.10.0
libtpu: 0.0.40
codegen_flags: <defaults>
</compile_context>

<pallas_src>
import jax
import jax.numpy as jnp
import numpy as np
from jax import lax
from jax.experimental import pallas as pl
from jax.experimental.pallas import tpu as pltpu


# ----------------------------------------------------------------------------
# static shape bookkeeping (mirrors the PyTorch module)
# ----------------------------------------------------------------------------
def _stage_defs(window_size, kernel_size):
    ks = [kernel_size, kernel_size - 2, kernel_size - 4, kernel_size - 6]
    cins = [3, 4, 8, 16]
    couts = [4, 8, 16, 32]
    stages = []
    L = window_size
    for k, ci, co in zip(ks, cins, couts):
        pad = k // 2
        l_out = L + 2 * pad - k + 1        # Conv1d output length
        l_pool = l_out // 2                # MaxPool1d(2,2), floor
        stages.append(dict(k=k, ci=ci, co=co, pad=pad,
                           l_in=L, l_out=l_out, l_pool=l_pool))
        L = l_pool
    feat = L
    expected = 32 * (window_size // 16 + 1)
    assert 32 * feat == expected, (
        f"window_size/kernel_size must make the flatten match Linear "
        f"in_features (got {32 * feat}, Linear expects {expected})")
    return stages, feat


def _conv_pool_matrix(w, st, parity):
    """Banded matrix mapping (l_in*Ci) lanes -> (l_pool*Co) lanes.

    Column j*Co+co is conv output position 2*j+parity of channel co; padding
    positions are simply absent rows (zero contribution), so conv + zero-pad
    becomes a single dense matmul.
    """
    Co, Ci, K = w.shape
    rows, cols, wco, wci, wk = [], [], [], [], []
    for j in range(st["l_pool"]):
        out_pos = 2 * j + parity
        for k in range(K):
            l_in = out_pos - st["pad"] + k
            if 0 <= l_in < st["l_in"]:
                for ci in range(Ci):
                    for co in range(Co):
                        rows.append(l_in * Ci + ci)
                        cols.append(j * Co + co)
                        wco.append(co)
                        wci.append(ci)
                        wk.append(k)
    mat = jnp.zeros((st["l_in"] * Ci, st["l_pool"] * Co), jnp.float32)
    if not rows:
        return mat
    vals = w[np.asarray(wco), np.asarray(wci), np.asarray(wk)]
    return mat.at[np.asarray(rows), np.asarray(cols)].set(vals)


# ----------------------------------------------------------------------------
# kernel body: 9 matmuls + elementwise, one (TB, lanes) batch tile per step
# ----------------------------------------------------------------------------
def _kernel(x_ref,
            we1, wo1, b1, we2, wo2, b2, we3, wo3, b3, we4, wo4, b4,
            wemb, bemb, out_ref):
    h = x_ref[...]                                         # (TB, lane0)
    for we, wo, bt in ((we1, wo1, b1), (we2, wo2, b2),
                       (we3, wo3, b3), (we4, wo4, b4)):
        even = jnp.dot(h, we[...], preferred_element_type=jnp.float32)
        odd = jnp.dot(h, wo[...], preferred_element_type=jnp.float32)
        # maxpool(relu(conv + b)) == relu(max(even, odd) + b)  (ReLU monotone)
        # TODO(synk): nn.Dropout(p=0.5) is treated as inference-mode identity.
        h = jnp.maximum(jnp.maximum(even, odd) + bt[...], 0.0)
    out_ref[...] = (jnp.dot(h, wemb[...], preferred_element_type=jnp.float32)
                    + bemb[...])


# ----------------------------------------------------------------------------
# wrapper
# ----------------------------------------------------------------------------
def cnn_encoder_forward(x_ncw, params, *, window_size, kernel_size, embed_size,
                        tb=256):
    stages, feat = _stage_defs(window_size, kernel_size)
    B = x_ncw.shape[0]
    assert x_ncw.shape == (B, 3, window_size)

    # --- parameter re-layout -------------------------------------------------
    mats = []
    for i, st in enumerate(stages):
        w = params[f"conv{i + 1}_w"].astype(jnp.float32)   # (Co, Ci, K)
        b = params[f"conv{i + 1}_b"].astype(jnp.float32)   # (Co,)
        we = _conv_pool_matrix(w, st, parity=0)
        wo = _conv_pool_matrix(w, st, parity=1)
        bt = jnp.tile(b, st["l_pool"]).reshape(1, -1)      # lane j*Co+co = b[co]
        mats.append([we, wo, bt])

    # pad the stage-0 contraction (= input lane) dim to a multiple of 128 so
    # the x block load is unmasked; extra zero rows contribute nothing.
    lane_in = window_size * 3
    lane0 = pl.cdiv(lane_in, 128) * 128
    pad_rows = lane0 - lane_in
    mats[0][0] = jnp.pad(mats[0][0], ((0, pad_rows), (0, 0)))
    mats[0][1] = jnp.pad(mats[0][1], ((0, pad_rows), (0, 0)))

    # final Linear: PyTorch flattens (B, 32, feat) as c*feat + l; the kernel's
    # lane order is l*32 + c, so permute the weight columns accordingly.
    w_embed = params["embed_w"].astype(jnp.float32)        # (E, 32*feat)
    b_embed = params["embed_b"].astype(jnp.float32).reshape(1, -1)
    w_emb_mat = jnp.transpose(
        w_embed.reshape(embed_size, 32, feat), (2, 1, 0)).reshape(
        32 * feat, embed_size)

    # --- input re-layout: NCW -> (B, W*3) lane-major (l*3 + ci) --------------
    x = jnp.transpose(x_ncw.astype(jnp.float32), (0, 2, 1)).reshape(B, lane_in)
    b8 = ((B + 7) // 8) * 8
    tb = min(tb, b8)
    b_pad = ((b8 + tb - 1) // tb) * tb
    x = jnp.pad(x, ((0, b_pad - B), (0, lane0 - lane_in)))

    inputs = [x]
    in_specs = [pl.BlockSpec((tb, lane0), lambda i: (i, 0))]
    for we, wo, bt in mats:
        inputs += [we, wo, bt]
        in_specs += [pl.BlockSpec(we.shape, lambda i: (0, 0)),
                     pl.BlockSpec(wo.shape, lambda i: (0, 0)),
                     pl.BlockSpec(bt.shape, lambda i: (0, 0))]
    inputs += [w_emb_mat, b_embed]
    in_specs += [pl.BlockSpec(w_emb_mat.shape, lambda i: (0, 0)),
                 pl.BlockSpec(b_embed.shape, lambda i: (0, 0))]

    out = pl.pallas_call(
        _kernel,
        out_shape=jax.ShapeDtypeStruct((b_pad, embed_size), jnp.float32),
        grid_spec=pltpu.PrefetchScalarGridSpec(
            num_scalar_prefetch=0,
            grid=(b_pad // tb,),
            in_specs=in_specs,
            out_specs=pl.BlockSpec((tb, embed_size), lambda i: (i, 0))),
        compiler_params=pltpu.CompilerParams(
            dimension_semantics=("parallel",)),
    )(*inputs)
    return out[:B]


# ----------------------------------------------------------------------------
# parameters + plain-JAX reference
# ----------------------------------------------------------------------------
def init_params(key, window_size, kernel_size, embed_size):
    specs = {
        "conv1_w": (4, 3, kernel_size), "conv1_b": (4,),
        "conv2_w": (8, 4, kernel_size - 2), "conv2_b": (8,),
        "conv3_w": (16, 8, kernel_size - 4), "conv3_b": (16,),
        "conv4_w": (32, 16, kernel_size - 6), "conv4_b": (32,),
        "embed_w": (embed_size, 32 * (window_size // 16 + 1)),
        "embed_b": (embed_size,),
    }
    params = {}
    keys = jax.random.split(key, len(specs))
    for (name, shape), k in zip(specs.items(), keys):
        if name.endswith("_w"):
            fan_in = int(np.prod(shape[1:]))
            params[name] = (1.0 / np.sqrt(fan_in)) * jax.random.normal(
                k, shape, dtype=jnp.float32)
        else:
            params[name] = 0.01 * jax.random.normal(k, shape, dtype=jnp.float32)
    return params


def reference_forward(x_ncw, params, *, window_size, kernel_size, embed_size):
    """Plain-JAX reference of the PyTorch forward (dropout = eval identity)."""
    out = x_ncw.astype(jnp.float32)
    ks = [kernel_size, kernel_size - 2, kernel_size - 4, kernel_size - 6]
    for i, k in enumerate(ks):
        w = params[f"conv{i + 1}_w"].astype(jnp.float32)
        b = params[f"conv{i + 1}_b"].astype(jnp.float32)
        pad = k // 2
        out = lax.conv_general_dilated(out, w, window_strides=(1,),
                                       padding=[(pad, pad)],
                                       dimension_numbers=("NCH", "OIH", "NCH"))
        out = jnp.maximum(out + b[None, :, None], 0.0)
        L = out.shape[-1]
        le = (L // 2) * 2
        out = out[:, :, :le].reshape(out.shape[0], out.shape[1], le // 2, 2).max(-1)
    flat = out.reshape(out.shape[0], -1)
    return flat @ params["embed_w"].astype(jnp.float32).T + \
        params["embed_b"].astype(jnp.float32)


if __name__ == "__main__":
    window_size, kernel_size, embed_size = 31, 8, 32   # 32*(31//16+1) == 64 features
    batch = 16

    key = jax.random.PRNGKey(0)
    pkey, xkey = jax.random.split(key)
    params = init_params(pkey, window_size, kernel_size, embed_size)
    x = jax.random.normal(xkey, (batch, 3, window_size), dtype=jnp.float32)

    out = cnn_encoder_forward(x, params, window_size=window_size,
                              kernel_size=kernel_size, embed_size=embed_size)
    out = jax.block_until_ready(out)

    ref = jax.block_until_ready(
        reference_forward(x, params, window_size=window_size,
                          kernel_size=kernel_size, embed_size=embed_size))
    np.testing.assert_allclose(np.asarray(out), np.asarray(ref),
                               rtol=2e-3, atol=2e-3)
    print("KERNEL_OK")
</pallas_src>

<mosaic_0001>
module attributes {stable_mosaic.version = 11 : i64} {
  func.func @_kernel(%arg0: i32, %arg1: memref<16x128xf32, #tpu.memory_space<vmem>>, %arg2: memref<128x64xf32, #tpu.memory_space<vmem>>, %arg3: memref<128x64xf32, #tpu.memory_space<vmem>>, %arg4: memref<1x64xf32, #tpu.memory_space<vmem>>, %arg5: memref<64x64xf32, #tpu.memory_space<vmem>>, %arg6: memref<64x64xf32, #tpu.memory_space<vmem>>, %arg7: memref<1x64xf32, #tpu.memory_space<vmem>>, %arg8: memref<64x64xf32, #tpu.memory_space<vmem>>, %arg9: memref<64x64xf32, #tpu.memory_space<vmem>>, %arg10: memref<1x64xf32, #tpu.memory_space<vmem>>, %arg11: memref<64x64xf32, #tpu.memory_space<vmem>>, %arg12: memref<64x64xf32, #tpu.memory_space<vmem>>, %arg13: memref<1x64xf32, #tpu.memory_space<vmem>>, %arg14: memref<64x32xf32, #tpu.memory_space<vmem>>, %arg15: memref<1x32xf32, #tpu.memory_space<vmem>>, %arg16: memref<16x32xf32, #tpu.memory_space<vmem>>) attributes {dimension_semantics = [#tpu.dimension_semantics<parallel>], iteration_bounds = array<i64: 1>, scalar_prefetch = 0 : i64, scratch_operands = 0 : i64, tpu.core_type = #tpu.core_type<tc>, window_params = [{transform_indices = @transform_0, window_bounds = array<i64: 16, 128>}, {pipeline_mode = #tpu.pipeline_mode<synchronous>, transform_indices = @transform_1, window_bounds = array<i64: 128, 64>}, {pipeline_mode = #tpu.pipeline_mode<synchronous>, transform_indices = @transform_2, window_bounds = array<i64: 128, 64>}, {pipeline_mode = #tpu.pipeline_mode<synchronous>, transform_indices = @transform_3, window_bounds = array<i64: 1, 64>}, {pipeline_mode = #tpu.pipeline_mode<synchronous>, transform_indices = @transform_4, window_bounds = array<i64: 64, 64>}, {pipeline_mode = #tpu.pipeline_mode<synchronous>, transform_indices = @transform_5, window_bounds = array<i64: 64, 64>}, {pipeline_mode = #tpu.pipeline_mode<synchronous>, transform_indices = @transform_6, window_bounds = array<i64: 1, 64>}, {pipeline_mode = #tpu.pipeline_mode<synchronous>, transform_indices = @transform_7, window_bounds = array<i64: 64, 64>}, {pipeline_mode = #tpu.pipeline_mode<synchronous>, transform_indices = @transform_8, window_bounds = array<i64: 64, 64>}, {pipeline_mode = #tpu.pipeline_mode<synchronous>, transform_indices = @transform_9, window_bounds = array<i64: 1, 64>}, {pipeline_mode = #tpu.pipeline_mode<synchronous>, transform_indices = @transform_10, window_bounds = array<i64: 64, 64>}, {pipeline_mode = #tpu.pipeline_mode<synchronous>, transform_indices = @transform_11, window_bounds = array<i64: 64, 64>}, {pipeline_mode = #tpu.pipeline_mode<synchronous>, transform_indices = @transform_12, window_bounds = array<i64: 1, 64>}, {pipeline_mode = #tpu.pipeline_mode<synchronous>, transform_indices = @transform_13, window_bounds = array<i64: 64, 32>}, {pipeline_mode = #tpu.pipeline_mode<synchronous>, transform_indices = @transform_14, window_bounds = array<i64: 1, 32>}, {transform_indices = @transform_15, window_bounds = array<i64: 16, 32>}]} {
    %c0 = arith.constant 0 : index
    %c0_0 = arith.constant 0 : index
    %0 = vector.load %arg1[%c0, %c0_0] : memref<16x128xf32, #tpu.memory_space<vmem>>, vector<16x128xf32>
    %c0_1 = arith.constant 0 : index
    %c0_2 = arith.constant 0 : index
    %1 = vector.load %arg2[%c0_1, %c0_2] : memref<128x64xf32, #tpu.memory_space<vmem>>, vector<128x64xf32>
    %cst = arith.constant dense<0.000000e+00> : vector<16x64xf32>
    %2 = tpu.matmul %0, %1, %cst {dimension_numbers = #tpu.dot_dimension_numbers<[1], [0], [0], [1], [0, 0, 1, 1], [], []>} : vector<16x128xf32>, vector<128x64xf32>, vector<16x64xf32> -> vector<16x64xf32>
    %c0_3 = arith.constant 0 : index
    %c0_4 = arith.constant 0 : index
    %3 = vector.load %arg3[%c0_3, %c0_4] : memref<128x64xf32, #tpu.memory_space<vmem>>, vector<128x64xf32>
    %cst_5 = arith.constant dense<0.000000e+00> : vector<16x64xf32>
    %4 = tpu.matmul %0, %3, %cst_5 {dimension_numbers = #tpu.dot_dimension_numbers<[1], [0], [0], [1], [0, 0, 1, 1], [], []>} : vector<16x128xf32>, vector<128x64xf32>, vector<16x64xf32> -> vector<16x64xf32>
    %5 = arith.maximumf %2, %4 : vector<16x64xf32>
    %c0_6 = arith.constant 0 : index
    %c0_7 = arith.constant 0 : index
    %6 = vector.load %arg4[%c0_6, %c0_7] : memref<1x64xf32, #tpu.memory_space<vmem>>, vector<1x64xf32>
    %7 = vector.broadcast %6 : vector<1x64xf32> to vector<16x64xf32>
    %8 = arith.addf %5, %7 : vector<16x64xf32>
    %cst_8 = arith.constant 0.000000e+00 : f32
    %9 = vector.broadcast %cst_8 : f32 to vector<16x64xf32>
    %10 = arith.maximumf %8, %9 : vector<16x64xf32>
    %c0_9 = arith.constant 0 : index
    %c0_10 = arith.constant 0 : index
    %11 = vector.load %arg5[%c0_9, %c0_10] : memref<64x64xf32, #tpu.memory_space<vmem>>, vector<64x64xf32>
    %cst_11 = arith.constant dense<0.000000e+00> : vector<16x64xf32>
    %12 = tpu.matmul %10, %11, %cst_11 {dimension_numbers = #tpu.dot_dimension_numbers<[1], [0], [0], [1], [0, 0, 1, 1], [], []>} : vector<16x64xf32>, vector<64x64xf32>, vector<16x64xf32> -> vector<16x64xf32>
    %c0_12 = arith.constant 0 : index
    %c0_13 = arith.constant 0 : index
    %13 = vector.load %arg6[%c0_12, %c0_13] : memref<64x64xf32, #tpu.memory_space<vmem>>, vector<64x64xf32>
    %cst_14 = arith.constant dense<0.000000e+00> : vector<16x64xf32>
    %14 = tpu.matmul %10, %13, %cst_14 {dimension_numbers = #tpu.dot_dimension_numbers<[1], [0], [0], [1], [0, 0, 1, 1], [], []>} : vector<16x64xf32>, vector<64x64xf32>, vector<16x64xf32> -> vector<16x64xf32>
    %15 = arith.maximumf %12, %14 : vector<16x64xf32>
    %c0_15 = arith.constant 0 : index
    %c0_16 = arith.constant 0 : index
    %16 = vector.load %arg7[%c0_15, %c0_16] : memref<1x64xf32, #tpu.memory_space<vmem>>, vector<1x64xf32>
    %17 = vector.broadcast %16 : vector<1x64xf32> to vector<16x64xf32>
    %18 = arith.addf %15, %17 : vector<16x64xf32>
    %cst_17 = arith.constant 0.000000e+00 : f32
    %19 = vector.broadcast %cst_17 : f32 to vector<16x64xf32>
    %20 = arith.maximumf %18, %19 : vector<16x64xf32>
    %c0_18 = arith.constant 0 : index
    %c0_19 = arith.constant 0 : index
    %21 = vector.load %arg8[%c0_18, %c0_19] : memref<64x64xf32, #tpu.memory_space<vmem>>, vector<64x64xf32>
    %cst_20 = arith.constant dense<0.000000e+00> : vector<16x64xf32>
    %22 = tpu.matmul %20, %21, %cst_20 {dimension_numbers = #tpu.dot_dimension_numbers<[1], [0], [0], [1], [0, 0, 1, 1], [], []>} : vector<16x64xf32>, vector<64x64xf32>, vector<16x64xf32> -> vector<16x64xf32>
    %c0_21 = arith.constant 0 : index
    %c0_22 = arith.constant 0 : index
    %23 = vector.load %arg9[%c0_21, %c0_22] : memref<64x64xf32, #tpu.memory_space<vmem>>, vector<64x64xf32>
    %cst_23 = arith.constant dense<0.000000e+00> : vector<16x64xf32>
    %24 = tpu.matmul %20, %23, %cst_23 {dimension_numbers = #tpu.dot_dimension_numbers<[1], [0], [0], [1], [0, 0, 1, 1], [], []>} : vector<16x64xf32>, vector<64x64xf32>, vector<16x64xf32> -> vector<16x64xf32>
    %25 = arith.maximumf %22, %24 : vector<16x64xf32>
    %c0_24 = arith.constant 0 : index
    %c0_25 = arith.constant 0 : index
    %26 = vector.load %arg10[%c0_24, %c0_25] : memref<1x64xf32, #tpu.memory_space<vmem>>, vector<1x64xf32>
    %27 = vector.broadcast %26 : vector<1x64xf32> to vector<16x64xf32>
    %28 = arith.addf %25, %27 : vector<16x64xf32>
    %cst_26 = arith.constant 0.000000e+00 : f32
    %29 = vector.broadcast %cst_26 : f32 to vector<16x64xf32>
    %30 = arith.maximumf %28, %29 : vector<16x64xf32>
    %c0_27 = arith.constant 0 : index
    %c0_28 = arith.constant 0 : index
    %31 = vector.load %arg11[%c0_27, %c0_28] : memref<64x64xf32, #tpu.memory_space<vmem>>, vector<64x64xf32>
    %cst_29 = arith.constant dense<0.000000e+00> : vector<16x64xf32>
    %32 = tpu.matmul %30, %31, %cst_29 {dimension_numbers = #tpu.dot_dimension_numbers<[1], [0], [0], [1], [0, 0, 1, 1], [], []>} : vector<16x64xf32>, vector<64x64xf32>, vector<16x64xf32> -> vector<16x64xf32>
    %c0_30 = arith.constant 0 : index
    %c0_31 = arith.constant 0 : index
    %33 = vector.load %arg12[%c0_30, %c0_31] : memref<64x64xf32, #tpu.memory_space<vmem>>, vector<64x64xf32>
    %cst_32 = arith.constant dense<0.000000e+00> : vector<16x64xf32>
    %34 = tpu.matmul %30, %33, %cst_32 {dimension_numbers = #tpu.dot_dimension_numbers<[1], [0], [0], [1], [0, 0, 1, 1], [], []>} : vector<16x64xf32>, vector<64x64xf32>, vector<16x64xf32> -> vector<16x64xf32>
    %35 = arith.maximumf %32, %34 : vector<16x64xf32>
    %c0_33 = arith.constant 0 : index
    %c0_34 = arith.constant 0 : index
    %36 = vector.load %arg13[%c0_33, %c0_34] : memref<1x64xf32, #tpu.memory_space<vmem>>, vector<1x64xf32>
    %37 = vector.broadcast %36 : vector<1x64xf32> to vector<16x64xf32>
    %38 = arith.addf %35, %37 : vector<16x64xf32>
    %cst_35 = arith.constant 0.000000e+00 : f32
    %39 = vector.broadcast %cst_35 : f32 to vector<16x64xf32>
    %40 = arith.maximumf %38, %39 : vector<16x64xf32>
    %c0_36 = arith.constant 0 : index
    %c0_37 = arith.constant 0 : index
    %41 = vector.load %arg14[%c0_36, %c0_37] : memref<64x32xf32, #tpu.memory_space<vmem>>, vector<64x32xf32>
    %cst_38 = arith.constant dense<0.000000e+00> : vector<16x32xf32>
    %42 = tpu.matmul %40, %41, %cst_38 {dimension_numbers = #tpu.dot_dimension_numbers<[1], [0], [0], [1], [0, 0, 1, 1], [], []>} : vector<16x64xf32>, vector<64x32xf32>, vector<16x32xf32> -> vector<16x32xf32>
    %c0_39 = arith.constant 0 : index
    %c0_40 = arith.constant 0 : index
    %43 = vector.load %arg15[%c0_39, %c0_40] : memref<1x32xf32, #tpu.memory_space<vmem>>, vector<1x32xf32>
    %44 = vector.broadcast %43 : vector<1x32xf32> to vector<16x32xf32>
    %45 = arith.addf %42, %44 : vector<16x32xf32>
    %c0_41 = arith.constant 0 : index
    %c0_42 = arith.constant 0 : index
    %46 = vector.load %arg16[%c0_41, %c0_42] : memref<16x32xf32, #tpu.memory_space<vmem>>, vector<16x32xf32>
    tpu.vector_store %arg16[%c0_41, %c0_42], %45 {strides = array<i32>} : memref<16x32xf32, #tpu.memory_space<vmem>>, vector<16x32xf32>,
    return
  }
  func.func @transform_0(%arg0: i32) -> (i32, i32) {
    %c0_i32 = arith.constant 0 : i32
    %c0_i32_0 = arith.constant 0 : i32
    return %arg0, %c0_i32 : i32, i32
  }
  func.func @transform_1(%arg0: i32) -> (i32, i32) {
    %c0_i32 = arith.constant 0 : i32
    %c0_i32_0 = arith.constant 0 : i32
    %c0_i32_1 = arith.constant 0 : i32
    return %c0_i32, %c0_i32_0 : i32, i32
  }
  func.func @transform_2(%arg0: i32) -> (i32, i32) {
    %c0_i32 = arith.constant 0 : i32
    %c0_i32_0 = arith.constant 0 : i32
    %c0_i32_1 = arith.constant 0 : i32
    return %c0_i32, %c0_i32_0 : i32, i32
  }
  func.func @transform_3(%arg0: i32) -> (i32, i32) {
    %c0_i32 = arith.constant 0 : i32
    %c0_i32_0 = arith.constant 0 : i32
    %c0_i32_1 = arith.constant 0 : i32
    return %c0_i32, %c0_i32_0 : i32, i32
  }
  func.func @transform_4(%arg0: i32) -> (i32, i32) {
    %c0_i32 = arith.constant 0 : i32
    %c0_i32_0 = arith.constant 0 : i32
    %c0_i32_1 = arith.constant 0 : i32
    return %c0_i32, %c0_i32_0 : i32, i32
  }
  func.func @transform_5(%arg0: i32) -> (i32, i32) {
    %c0_i32 = arith.constant 0 : i32
    %c0_i32_0 = arith.constant 0 : i32
    %c0_i32_1 = arith.constant 0 : i32
    return %c0_i32, %c0_i32_0 : i32, i32
  }
  func.func @transform_6(%arg0: i32) -> (i32, i32) {
    %c0_i32 = arith.constant 0 : i32
    %c0_i32_0 = arith.constant 0 : i32
    %c0_i32_1 = arith.constant 0 : i32
    return %c0_i32, %c0_i32_0 : i32, i32
  }
  func.func @transform_7(%arg0: i32) -> (i32, i32) {
    %c0_i32 = arith.constant 0 : i32
    %c0_i32_0 = arith.constant 0 : i32
    %c0_i32_1 = arith.constant 0 : i32
    return %c0_i32, %c0_i32_0 : i32, i32
  }
  func.func @transform_8(%arg0: i32) -> (i32, i32) {
    %c0_i32 = arith.constant 0 : i32
    %c0_i32_0 = arith.constant 0 : i32
    %c0_i32_1 = arith.constant 0 : i32
    return %c0_i32, %c0_i32_0 : i32, i32
  }
  func.func @transform_9(%arg0: i32) -> (i32, i32) {
    %c0_i32 = arith.constant 0 : i32
    %c0_i32_0 = arith.constant 0 : i32
    %c0_i32_1 = arith.constant 0 : i32
    return %c0_i32, %c0_i32_0 : i32, i32
  }
  func.func @transform_10(%arg0: i32) -> (i32, i32) {
    %c0_i32 = arith.constant 0 : i32
    %c0_i32_0 = arith.constant 0 : i32
    %c0_i32_1 = arith.constant 0 : i32
    return %c0_i32, %c0_i32_0 : i32, i32
  }
  func.func @transform_11(%arg0: i32) -> (i32, i32) {
    %c0_i32 = arith.constant 0 : i32
    %c0_i32_0 = arith.constant 0 : i32
    %c0_i32_1 = arith.constant 0 : i32
    return %c0_i32, %c0_i32_0 : i32, i32
  }
  func.func @transform_12(%arg0: i32) -> (i32, i32) {
    %c0_i32 = arith.constant 0 : i32
    %c0_i32_0 = arith.constant 0 : i32
    %c0_i32_1 = arith.constant 0 : i32
    return %c0_i32, %c0_i32_0 : i32, i32
  }
  func.func @transform_13(%arg0: i32) -> (i32, i32) {
    %c0_i32 = arith.constant 0 : i32
    %c0_i32_0 = arith.constant 0 : i32
    %c0_i32_1 = arith.constant 0 : i32
    return %c0_i32, %c0_i32_0 : i32, i32
  }
  func.func @transform_14(%arg0: i32) -> (i32, i32) {
    %c0_i32 = arith.constant 0 : i32
    %c0_i32_0 = arith.constant 0 : i32
    %c0_i32_1 = arith.constant 0 : i32
    return %c0_i32, %c0_i32_0 : i32, i32
  }
  func.func @transform_15(%arg0: i32) -> (i32, i32) {
    %c0_i32 = arith.constant 0 : i32
    %c0_i32_0 = arith.constant 0 : i32
    return %arg0, %c0_i32 : i32, i32
  }
}

</mosaic_0001>

<bundles_post_ra>
// kernel: tpu_custom_call.1
= control target key start
LH: loop header
LB: loop body
LE: loop exit
PB: predicated region body
PF: predicated region fallthrough
CT: control target
= control target key end

     0   :  { %20 = vsyncpa [#allocation3], 0  ;;  %s1897_s0 = inlined_call_operand.hbm [shape: f32[16,128], index: 0, kind: input, shape index: {}]   ;;  %s1898_s1 = inlined_call_operand.vmem [shape: f32[128,64], index: 1, kind: input, shape index: {}]   ;;  %s1899_s2 = inlined_call_operand.vmem [shape: f32[128,64], index: 2, kind: input, shape index: {}]   ;;  %s1900_s3 = inlined_call_operand.vmem [shape: f32[1,64], index: 3, kind: input, shape index: {}]   ;;  %s1901_s4 = inlined_call_operand.vmem [shape: f32[64,64], index: 4, kind: input, shape index: {}]   ;;  %s1902_s5 = inlined_call_operand.vmem [shape: f32[64,64], index: 5, kind: input, shape index: {}]   ;;  %s1903_s6 = inlined_call_operand.vmem [shape: f32[1,64], index: 6, kind: input, shape index: {}]   ;;  %s1904_s7 = inlined_call_operand.vmem [shape: f32[64,64], index: 7, kind: input, shape index: {}]   ;;  %s1905_s8 = inlined_call_operand.vmem [shape: f32[64,64], index: 8, kind: input, shape index: {}]   ;;  %s1906_s9 = inlined_call_operand.vmem [shape: f32[1,64], index: 9, kind: input, shape index: {}]   ;;  %s1907_s10 = inlined_call_operand.vmem [shape: f32[64,64], index: 10, kind: input, shape index: {}]   ;;  %s1908_s11 = inlined_call_operand.vmem [shape: f32[64,64], index: 11, kind: input, shape index: {}]   ;;  %s1909_s12 = inlined_call_operand.vmem [shape: f32[1,64], index: 12, kind: input, shape index: {}]   ;;  %s1910_s13 = inlined_call_operand.vmem [shape: f32[64,32], index: 13, kind: input, shape index: {}]   ;;  %s1911_s14 = inlined_call_operand.vmem [shape: f32[1,32], index: 14, kind: input, shape index: {}]   ;;  %s1912_s15 = inlined_call_operand.hbm [shape: f32[16,32], index: 15, kind: output, shape index: {}]  }
   0x1   :  { %21 = vsyncpa [#allocation4], 0  ;;  %s1490_s18 = smov [#allocation2]   ;;  %s1442_s22 = scalar_lea.hbm %s1897_s0, 256 }
   0x2   :  { %s27_s19 = sshll.u32 %s1490_s18, 4  ;;  %p1443_p0 = scmp.ne.s32.totalorder %s1897_s0, %s1442_s22  ;;  %s28_s19 = int_to_ptr.vmem [resolvable:$true] %s27_s19 }
   0x3   :  { %p1446_p1 = scmp.lt.u32.totalorder %s1442_s22, %s1897_s0 }
   0x5   :  { %p1448_p2 = pnand %p1446_p1, %p1443_p0 }
   0x7   :  { %1451 = shalt.err (!%p1448_p2)
}
   0x8   :  { %s1452_s27 = scalar_lea.vmem %s28_s19, 256  ;;  %p1457_p4 = scmp.lt.s32.totalorder %s28_s19, %s28_s19 }
   0x9   :  { %p1453_p3 = scmp.ne.s32.totalorder %s28_s19, %s1452_s27  ;;  %p1458_p5 = scmp.lt.s32.totalorder %s1452_s27, %s1452_s27 }
   0xb   :  { %p1459_p6 = por %p1458_p5, %p1457_p4 }
   0xd   :  { %p1460_p7 = pnand %p1459_p6, %p1453_p3 }
   0xf   :  { %1463 = shalt.err (!%p1460_p7)
}
  0x10   :  { %s1491_s28 = smov 128   ;;  %s1492_s29 = smov 8  }
  0x11   :  { %33 = dma.hbm_to_vmem [thread:$0]  %s1897_s0, 256, %s28_s19, [#allocation3], %s1491_s28, %s1491_s28, %s1492_s29  }
  0x12   :  { %1486 = dma.done.wait [#allocation3], 256  }
  0x13   :  { %1487 = vsyncadd [#allocation3], 4294967040  ;;  %v67_v0 = vld [vmem:[%s1898_s1] sm:$0xff]  ;;  %v68_v1 = vld [vmem:[%s1898_s1 + $0x8] sm:$0xff]  ;;  %vm270_vm0 = vcmask 523264   ;;  %vm914_vm1 = vcmask 261120  }
  0x14   :  { %v158_v2 = vld [vmem:[%s1899_s2] sm:$0xff]  ;;  %v1262_v3 = vpack.c.bf16 %v68_v1, %v67_v0  ;;  %v159_v4 = vld [vmem:[%s1899_s2 + $0x8] sm:$0xff]  ;;  %v69_v5 = vld [vmem:[%s1898_s1 + $0x10] sm:$0xff] }
  0x15   :  { %v70_v6 = vld [vmem:[%s1898_s1 + $0x18] sm:$0xff]  ;;  %v1294_v7 = vpack.c.bf16 %v159_v4, %v158_v2  ;;  %v160_v9 = vld [vmem:[%s1899_s2 + $0x10] sm:$0xff]  ;;  %v71_v11 = vld [vmem:[%s1898_s1 + $0x20] sm:$0xff] }
  0x16   :  { %v1266_v8 = vpack.c.bf16 %v70_v6, %v69_v5  ;;  %v161_v10 = vld [vmem:[%s1899_s2 + $0x18] sm:$0xff]  ;;  %1263 = vmatprep.subr.bf16.mxu0 %v1262_v3  ;;  %v72_v13 = vld [vmem:[%s1898_s1 + $0x28] sm:$0xff]  ;;  %v162_v14 = vld [vmem:[%s1899_s2 + $0x20] sm:$0xff] }
  0x17   :  { %v1298_v12 = vpack.c.bf16 %v161_v10, %v160_v9  ;;  %v163_v15 = vld [vmem:[%s1899_s2 + $0x28] sm:$0xff]  ;;  %1295 = vmatprep.subr.bf16.mxu1 %v1294_v7  ;;  %1265 = vmatpush3.bf16.msra.mxu0 %v1262_v3  ;;  %v1270_v16 = vpack.c.bf16 %v72_v13, %v71_v11  ;;  %v73_v18 = vld [vmem:[%s1898_s1 + $0x30] sm:$0xff]  ;;  %v74_v19 = vld [vmem:[%s1898_s1 + $0x38] sm:$0xff] }
  0x18   :  { %1297 = vmatpush3.bf16.msra.mxu1 %v1294_v7  ;;  %1267 = vmatprep.subr.bf16.mxu0 %v1266_v8  ;;  %v1302_v17 = vpack.c.bf16 %v163_v15, %v162_v14  ;;  %v164_v20 = vld [vmem:[%s1899_s2 + $0x30] sm:$0xff]  ;;  %v165_v21 = vld [vmem:[%s1899_s2 + $0x38] sm:$0xff]  ;;  %v1274_v22 = vpack.c.bf16 %v74_v19, %v73_v18  ;;  %v75_v24 = vld [vmem:[%s1898_s1 + $0x40] sm:$0xff] }
  0x19   :  { %1299 = vmatprep.subr.bf16.mxu1 %v1298_v12  ;;  %v1306_v23 = vpack.c.bf16 %v165_v21, %v164_v20  ;;  %v76_v25 = vld [vmem:[%s1898_s1 + $0x48] sm:$0xff]  ;;  %v65_v26 = vld [vmem:[#allocation2] sm:$0xff]  ;;  %v77_v31 = vld [vmem:[%s1898_s1 + $0x50] sm:$0xff] }
  0x1a   :  { %v166_v27 = vld [vmem:[%s1899_s2 + $0x40] sm:$0xff]  ;;  %v167_v28 = vld [vmem:[%s1899_s2 + $0x48] sm:$0xff]  ;;  %1091 = vmatprep.mubr.f32.mxu0 %v65_v26  ;;  %1126 = vmatprep.mubr.f32.mxu1 %v65_v26  ;;  %v1278_v29 = vpack.c.bf16 %v76_v25, %v75_v24  ;;  %v78_v32 = vld [vmem:[%s1898_s1 + $0x58] sm:$0xff] }
  0x1b   :  { %1269 = vmatpush3.bf16.msra.mxu0 %v1266_v8  ;;  %v1310_v30 = vpack.c.bf16 %v167_v28, %v166_v27  ;;  %v168_v33 = vld [vmem:[%s1899_s2 + $0x50] sm:$0xff]  ;;  %v169_v34 = vld [vmem:[%s1899_s2 + $0x58] sm:$0xff]  ;;  %v1282_v35 = vpack.c.bf16 %v78_v32, %v77_v31  ;;  %v79_v37 = vld [vmem:[%s1898_s1 + $0x60] sm:$0xff] }
  0x1c   :  { %1301 = vmatpush3.bf16.msra.mxu1 %v1298_v12  ;;  %1271 = vmatprep.subr.bf16.mxu0 %v1270_v16  ;;  %v1314_v36 = vpack.c.bf16 %v169_v34, %v168_v33  ;;  %v80_v38 = vld [vmem:[%s1898_s1 + $0x68] sm:$0xff]  ;;  %v170_v39 = vld [vmem:[%s1899_s2 + $0x60] sm:$0xff]  ;;  %v81_v43 = vld [vmem:[%s1898_s1 + $0x70] sm:$0xff] }
  0x1d   :  { %1303 = vmatprep.subr.bf16.mxu1 %v1302_v17  ;;  %v171_v40 = vld [vmem:[%s1899_s2 + $0x68] sm:$0xff]  ;;  %v1286_v41 = vpack.c.bf16 %v80_v38, %v79_v37  ;;  %v82_v44 = vld [vmem:[%s1898_s1 + $0x78] sm:$0xff]  ;;  %v172_v45 = vld [vmem:[%s1899_s2 + $0x70] sm:$0xff] }
  0x1e   :  { %v1318_v42 = vpack.c.bf16 %v171_v40, %v170_v39  ;;  %v173_v46 = vld [vmem:[%s1899_s2 + $0x78] sm:$0xff]  ;;  %v1290_v47 = vpack.c.bf16 %v82_v44, %v81_v43  ;;  %v262_v49 = vld [vmem:[%s1901_s4] sm:$0xff]  ;;  %v263_v50 = vld [vmem:[%s1901_s4 + $0x8] sm:$0xff] }
  0x1f   :  { %1273 = vmatpush3.bf16.msra.mxu0 %v1270_v16  ;;  %v1322_v48 = vpack.c.bf16 %v173_v46, %v172_v45  ;;  %v352_v51 = vld [vmem:[%s1902_s5] sm:$0xff]  ;;  %v353_v52 = vld [vmem:[%s1902_s5 + $0x8] sm:$0xff]  ;;  %v1326_v53 = vpack.c.bf16 %v263_v50, %v262_v49  ;;  %v264_v55 = vld [vmem:[%s1901_s4 + $0x10] sm:$0xff] }
  0x20   :  { %1305 = vmatpush3.bf16.msra.mxu1 %v1302_v17  ;;  %1275 = vmatprep.subr.bf16.mxu0 %v1274_v22  ;;  %v1342_v54 = vpack.c.bf16 %v353_v52, %v352_v51  ;;  %v265_v56 = vld [vmem:[%s1901_s4 + $0x18] sm:$0xff]  ;;  %v354_v57 = vld [vmem:[%s1902_s5 + $0x10] sm:$0xff]  ;;  %v66_v59 = vld [vmem:[#allocation2 + $0x8] sm:$0xff] }
  0x21   :  { %1307 = vmatprep.subr.bf16.mxu1 %v1306_v23  ;;  %v355_v58 = vld [vmem:[%s1902_s5 + $0x18] sm:$0xff]  ;;  %v1330_v60 = vpack.c.bf16 %v265_v56, %v264_v55  ;;  %v266_v62 = vld [vmem:[%s1901_s4 + $0x20] sm:$0xff]  ;;  %v267_v63 = vld [vmem:[%s1901_s4 + $0x28] sm:$0xff] }
  0x22   :  { %v1346_v61 = vpack.c.bf16 %v355_v58, %v354_v57  ;;  %v356_v0 = vld [vmem:[%s1902_s5 + $0x20] sm:$0xff]  ;;  %v1334_v1 = vpack.c.bf16 %v267_v63, %v266_v62  ;;  %v357_v2 = vld [vmem:[%s1902_s5 + $0x28] sm:$0xff]  ;;  %v268_v4 = vld [vmem:[%s1901_s4 + $0x30] sm:$0xff] }
  0x23   :  { %1277 = vmatpush3.bf16.msra.mxu0 %v1274_v22  ;;  %v1350_v3 = vpack.c.bf16 %v357_v2, %v356_v0  ;;  %v269_v5 = vld [vmem:[%s1901_s4 + $0x38] sm:$0xff]  ;;  %v358_v6 = vld [vmem:[%s1902_s5 + $0x30] sm:$0xff]  ;;  %v448_v10 = vld [vmem:[%s1904_s7] sm:$0xff]  ;;  %s1493_s4 = smov [#allocation5]  }
  0x24   :  { %1309 = vmatpush3.bf16.msra.mxu1 %v1306_v23  ;;  %1279 = vmatprep.subr.bf16.mxu0 %v1278_v29  ;;  %v1338_v7 = vpack.c.bf16 %v269_v5, %v268_v4  ;;  %v359_v8 = vld [vmem:[%s1902_s5 + $0x38] sm:$0xff]  ;;  %v449_v11 = vld [vmem:[%s1904_s7 + $0x8] sm:$0xff]  ;;  %v537_v12 = vld [vmem:[%s1905_s8] sm:$0xff]  ;;  %s922_s26 = sshll.u32 %s1493_s4, 4  ;;  %s923_s26 = int_to_ptr.vmem [resolvable:$true] %s922_s26 }
  0x25   :  { %1311 = vmatprep.subr.bf16.mxu1 %v1310_v30  ;;  %v1354_v9 = vpack.c.bf16 %v359_v8, %v358_v6  ;;  %v1358_v13 = vpack.c.bf16 %v449_v11, %v448_v10  ;;  %v538_v14 = vld [vmem:[%s1905_s8 + $0x8] sm:$0xff]  ;;  %v934_v18 = vld [vmem:[%s1900_s3] ss:$0 sm:$0xff]  ;;  %v450_v24 = vld [vmem:[%s1904_s7 + $0x10] sm:$0xff]  ;;  %p1469_p9 = scmp.lt.s32.totalorder %s923_s26, %s923_s26 }
  0x26   :  { %v1374_v15 = vpack.c.bf16 %v538_v14, %v537_v12  ;;  %v451_v26 = vld [vmem:[%s1904_s7 + $0x18] sm:$0xff]  ;;  %v539_v27 = vld [vmem:[%s1905_s8 + $0x10] sm:$0xff]  ;;  %v452_v33 = vld [vmem:[%s1904_s7 + $0x20] sm:$0xff] }
  0x27   :  { %1281 = vmatpush3.bf16.msra.mxu0 %v1278_v29  ;;  %v540_v28 = vld [vmem:[%s1905_s8 + $0x18] sm:$0xff]  ;;  %v1362_v31 = vpack.c.bf16 %v451_v26, %v450_v24  ;;  %v453_v34 = vld [vmem:[%s1904_s7 + $0x28] sm:$0xff]  ;;  %v454_v39 = vld [vmem:[%s1904_s7 + $0x30] sm:$0xff] }
  0x28   :  { %1313 = vmatpush3.bf16.msra.mxu1 %v1310_v30  ;;  %1283 = vmatprep.subr.bf16.mxu0 %v1282_v35  ;;  %v1378_v32 = vpack.c.bf16 %v540_v28, %v539_v27  ;;  %v542_v37 = vld [vmem:[%s1905_s8 + $0x28] sm:$0xff]  ;;  %v455_v40 = vld [vmem:[%s1904_s7 + $0x38] sm:$0xff]  ;;  %v633_v45 = vld [vmem:[%s1907_s10] sm:$0xff] }
  0x29   :  { %1315 = vmatprep.subr.bf16.mxu1 %v1314_v36  ;;  %v544_v43 = vld [vmem:[%s1905_s8 + $0x38] sm:$0xff]  ;;  %v634_v46 = vld [vmem:[%s1907_s10 + $0x8] sm:$0xff]  ;;  %v724_v62 = vld [vmem:[%s1908_s11 + $0x10] sm:$0xff] }
  0x2a   :  { %v723_v49 = vld [vmem:[%s1908_s11 + $0x8] sm:$0xff]  ;;  %v725_v63 = vld [vmem:[%s1908_s11 + $0x18] sm:$0xff]  ;;  %v637_v4 = vld [vmem:[%s1907_s10 + $0x20] sm:$0xff] }
  0x2b   :  { %1285 = vmatpush3.bf16.msra.mxu0 %v1282_v35  ;;  %v541_v35 = vld [vmem:[%s1905_s8 + $0x20] sm:$0xff]  ;;  %v638_v5 = vld [vmem:[%s1907_s10 + $0x28] sm:$0xff]  ;;  %v639_v10 = vld [vmem:[%s1907_s10 + $0x30] sm:$0xff] }
  0x2c   :  { %1317 = vmatpush3.bf16.msra.mxu1 %v1314_v36  ;;  %1287 = vmatprep.subr.bf16.mxu0 %v1286_v41  ;;  %v1366_v36 = vpack.c.bf16 %v453_v34, %v452_v33  ;;  %v1382_v38 = vpack.c.bf16 %v542_v37, %v541_v35  ;;  %v726_v6 = vld [vmem:[%s1908_s11 + $0x20] sm:$0xff]  ;;  %v727_v8 = vld [vmem:[%s1908_s11 + $0x28] sm:$0xff]  ;;  %v640_v11 = vld [vmem:[%s1907_s10 + $0x38] sm:$0xff] }
  0x2d   :  { %1319 = vmatprep.subr.bf16.mxu1 %v1318_v42  ;;  %v728_v12 = vld [vmem:[%s1908_s11 + $0x30] sm:$0xff]  ;;  %v729_v14 = vld [vmem:[%s1908_s11 + $0x38] sm:$0xff]  ;;  %v822_v33 = vld [vmem:[%s1910_s13 + $0x20] sm:$0xff] }
  0x2e   :  { %v820_v28 = vld [vmem:[%s1910_s13 + $0x10] sm:$0xff]  ;;  %v823_v34 = vld [vmem:[%s1910_s13 + $0x28] sm:$0xff]  ;;  %v825_v37 = vld [vmem:[%s1910_s13 + $0x38] sm:$0xff] }
  0x2f   :  { %1289 = vmatpush3.bf16.msra.mxu0 %v1286_v41  ;;  %v543_v41 = vld [vmem:[%s1905_s8 + $0x30] sm:$0xff]  ;;  %v1430_v35 = vpack.c.bf16 %v823_v34, %v822_v33 }
  0x30   :  { %1321 = vmatpush3.bf16.msra.mxu1 %v1318_v42  ;;  %1291 = vmatprep.subr.bf16.mxu0 %v1290_v47  ;;  %v1370_v42 = vpack.c.bf16 %v455_v40, %v454_v39  ;;  %v1386_v44 = vpack.c.bf16 %v544_v43, %v543_v41  ;;  %v949_v41 = vld [vmem:[%s1909_s12] ss:$0 sm:$0xff]  ;;  %s1464_s12 = scalar_lea.vmem %s923_s26, 256 }
  0x31   :  { %1323 = vmatprep.subr.bf16.mxu1 %v1322_v48  ;;  %p1465_p8 = scmp.ne.s32.totalorder %s923_s26, %s1464_s12  ;;  %p1470_p10 = scmp.lt.s32.totalorder %s1464_s12, %s1464_s12 }
  0x33   :  { %1293 = vmatpush3.bf16.msra.mxu0 %v1290_v47  ;;  %v722_v47 = vld [vmem:[%s1908_s11] sm:$0xff]  ;;  %p1471_p11 = por %p1470_p10, %p1469_p9 }
  0x34   :  { %1325 = vmatpush3.bf16.msra.mxu1 %v1322_v48  ;;  %1327 = vmatprep.subr.bf16.mxu0 %v1326_v53  ;;  %v1390_v48 = vpack.c.bf16 %v634_v46, %v633_v45  ;;  %v1406_v50 = vpack.c.bf16 %v723_v49, %v722_v47 }
  0x35   :  { %1343 = vmatprep.subr.bf16.mxu1 %v1342_v54  ;;  %p1472_p12 = pnand %p1471_p11, %p1465_p8 }
  0x36   :  { %1092 = vmatmul.mubr.f32.vlgmr.msra.gmra.mrb[0].mxu0 %v66_v59 }
  0x37   :  { %1127 = vmatmul.mubr.f32.vlgmr.msra.gmra.mrb[0].mxu1 %v66_v59  ;;  %1329 = vmatpush3.bf16.msra.mxu0 %v1326_v53  ;;  %v939_v53 = vld [vmem:[%s1903_s6] ss:$0 sm:$0xff]  ;;  %v635_v59 = vld [vmem:[%s1907_s10 + $0x10] sm:$0xff] }
  0x38   :  { %1345 = vmatpush3.bf16.msra.mxu1 %v1342_v54  ;;  %1331 = vmatprep.subr.bf16.mxu0 %v1330_v60 }
  0x39   :  { %1347 = vmatprep.subr.bf16.mxu1 %v1346_v61 }
  0x3b   :  { %1333 = vmatpush3.bf16.msra.mxu0 %v1330_v60 }
  0x3c   :  { %1349 = vmatpush3.bf16.msra.mxu1 %v1346_v61  ;;  %1335 = vmatprep.subr.bf16.mxu0 %v1334_v1  ;;  %v636_v61 = vld [vmem:[%s1907_s10 + $0x18] sm:$0xff] }
  0x3d   :  { %1351 = vmatprep.subr.bf16.mxu1 %v1350_v3  ;;  %v1394_v2 = vpack.c.bf16 %v636_v61, %v635_v59 }
  0x3f   :  { %1337 = vmatpush3.bf16.msra.mxu0 %v1334_v1 }
  0x40   :  { %1353 = vmatpush3.bf16.msra.mxu1 %v1350_v3  ;;  %1339 = vmatprep.subr.bf16.mxu0 %v1338_v7  ;;  %v1410_v3 = vpack.c.bf16 %v725_v63, %v724_v62 }
  0x41   :  { %1355 = vmatprep.subr.bf16.mxu1 %v1354_v9 }
  0x43   :  { %1341 = vmatpush3.bf16.msra.mxu0 %v1338_v7  ;;  %v1398_v7 = vpack.c.bf16 %v638_v5, %v637_v4 }
  0x44   :  { %1357 = vmatpush3.bf16.msra.mxu1 %v1354_v9  ;;  %1359 = vmatprep.subr.bf16.mxu0 %v1358_v13  ;;  %v1414_v9 = vpack.c.bf16 %v727_v8, %v726_v6 }
  0x45   :  { %1375 = vmatprep.subr.bf16.mxu1 %v1374_v15 }
 0x109   :  { %v1093_v16 = vpop.f32.mrb[0].mxu0 }
 0x10a   :  { %v1128_v17 = vpop.f32.mrb[0].mxu1  ;;  %v149_v19 = vpop.f32.mrb[1].mxu0 }
 0x10b   :  { %v250_v20 = vmax.f32 %v1093_v16, %v1128_v17  ;;  %v240_v21 = vpop.f32.mrb[1].mxu1  ;;  %v818_v16 = vld [vmem:[%s1910_s13] sm:$0xff]  ;;  %v819_v17 = vld [vmem:[%s1910_s13 + $0x8] sm:$0xff] }
 0x10c   :  { %v249_v22 = vmax.f32 %v149_v19, %v240_v21  ;;  %v944_v21 = vld [vmem:[%s1906_s9] ss:$0 sm:$0xff] }
 0x10d   :  { %v259_v23 = vadd.f32 %v934_v18, %v250_v20 }
 0x10e   :  { %v258_v25 = vadd.f32 %v934_v18, %v249_v22  ;;  %v1422_v18 = vpack.c.bf16 %v819_v17, %v818_v16 }
 0x10f   :  { %v261_v30 = vmax.f32 %v259_v23, 0.0 }
 0x110   :  { %v260_v29 = vmax.f32 %v258_v25, 0.0 }
 0x112   :  { %1145 = vmatprep.mubr.msk.f32.mxu0 %vm270_vm0, %v260_v29  ;;  %1164 = vmatprep.mubr.msk.f32.mxu1 %vm270_vm0, %v260_v29  ;;  %v821_v29 = vld [vmem:[%s1910_s13 + $0x18] sm:$0xff] }
 0x113   :  { %1146 = vmatmul.mubr.msk.f32.vlgmr.msra.gmra.mrb[2].mxu0 %vm270_vm0, %v261_v30  ;;  %1165 = vmatmul.mubr.msk.f32.vlgmr.msra.gmra.mrb[2].mxu1 %vm270_vm0, %v261_v30 }
 0x114   :  { %1361 = vmatpush3.bf16.msra.mxu0 %v1358_v13  ;;  %1377 = vmatpush3.bf16.msra.mxu1 %v1374_v15  ;;  %v1402_v13 = vpack.c.bf16 %v640_v11, %v639_v10  ;;  %v1418_v15 = vpack.c.bf16 %v729_v14, %v728_v12 }
 0x115   :  { %1363 = vmatprep.subr.bf16.mxu0 %v1362_v31  ;;  %1379 = vmatprep.subr.bf16.mxu1 %v1378_v32 }
 0x118   :  { %1365 = vmatpush3.bf16.msra.mxu0 %v1362_v31  ;;  %1381 = vmatpush3.bf16.msra.mxu1 %v1378_v32  ;;  %v1426_v32 = vpack.c.bf16 %v821_v29, %v820_v28 }
 0x119   :  { %1367 = vmatprep.subr.bf16.mxu0 %v1366_v36  ;;  %1383 = vmatprep.subr.bf16.mxu1 %v1382_v38 }
 0x11c   :  { %1369 = vmatpush3.bf16.msra.mxu0 %v1366_v36  ;;  %1385 = vmatpush3.bf16.msra.mxu1 %v1382_v38  ;;  %v824_v36 = vld [vmem:[%s1910_s13 + $0x30] sm:$0xff] }
 0x11d   :  { %1371 = vmatprep.subr.bf16.mxu0 %v1370_v42  ;;  %1387 = vmatprep.subr.bf16.mxu1 %v1386_v44  ;;  %v1434_v38 = vpack.c.bf16 %v825_v37, %v824_v36 }
 0x120   :  { %1373 = vmatpush3.bf16.msra.mxu0 %v1370_v42  ;;  %1389 = vmatpush3.bf16.msra.mxu1 %v1386_v44 }
 0x121   :  { %1391 = vmatprep.subr.bf16.mxu0 %v1390_v48  ;;  %1407 = vmatprep.subr.bf16.mxu1 %v1406_v50 }
 0x1e6   :  { %v1147_v51 = vpop.f32.mrb[2].mxu0  ;;  %v1166_v52 = vpop.f32.mrb[2].mxu1 }
 0x1e7   :  { %v436_v54 = vmax.f32 %v1147_v51, %v1166_v52  ;;  %v343_v55 = vpop.f32.mrb[3].mxu0  ;;  %v426_v56 = vpop.f32.mrb[3].mxu1 }
 0x1e8   :  { %v435_v57 = vmax.f32 %v343_v55, %v426_v56 }
 0x1e9   :  { %v445_v58 = vadd.f32 %v939_v53, %v436_v54 }
 0x1ea   :  { %v444_v60 = vadd.f32 %v939_v53, %v435_v57 }
 0x1eb   :  { %v447_v1 = vmax.f32 %v445_v58, 0.0 }
 0x1ec   :  { %v446_v0 = vmax.f32 %v444_v60, 0.0 }
 0x1ee   :  { %1183 = vmatprep.mubr.msk.f32.mxu0 %vm270_vm0, %v446_v0  ;;  %1202 = vmatprep.mubr.msk.f32.mxu1 %vm270_vm0, %v446_v0 }
 0x1ef   :  { %1184 = vmatmul.mubr.msk.f32.vlgmr.msra.gmra.mrb[4].mxu0 %vm270_vm0, %v447_v1  ;;  %1203 = vmatmul.mubr.msk.f32.vlgmr.msra.gmra.mrb[4].mxu1 %vm270_vm0, %v447_v1 }
 0x1f0   :  { %1393 = vmatpush3.bf16.msra.mxu0 %v1390_v48  ;;  %1409 = vmatpush3.bf16.msra.mxu1 %v1406_v50  ;;  %v950_v50 = vld [vmem:[%s1911_s14] ss:$0 sm:$0xff] }
 0x1f1   :  { %1395 = vmatprep.subr.bf16.mxu0 %v1394_v2  ;;  %1411 = vmatprep.subr.bf16.mxu1 %v1410_v3 }
 0x1f4   :  { %1397 = vmatpush3.bf16.msra.mxu0 %v1394_v2  ;;  %1413 = vmatpush3.bf16.msra.mxu1 %v1410_v3 }
 0x1f5   :  { %1399 = vmatprep.subr.bf16.mxu0 %v1398_v7  ;;  %1415 = vmatprep.subr.bf16.mxu1 %v1414_v9 }
 0x1f8   :  { %1401 = vmatpush3.bf16.msra.mxu0 %v1398_v7  ;;  %1417 = vmatpush3.bf16.msra.mxu1 %v1414_v9 }
 0x1f9   :  { %1403 = vmatprep.subr.bf16.mxu0 %v1402_v13  ;;  %1419 = vmatprep.subr.bf16.mxu1 %v1418_v15 }
 0x1fc   :  { %1405 = vmatpush3.bf16.msra.mxu0 %v1402_v13  ;;  %1421 = vmatpush3.bf16.msra.mxu1 %v1418_v15 }
 0x1fd   :  { %1423 = vmatprep.subr.bf16.mxu0 %v1422_v18 }
 0x2c2   :  { %v1185_v19 = vpop.f32.mrb[4].mxu0  ;;  %v1204_v20 = vpop.f32.mrb[4].mxu1 }
 0x2c3   :  { %v621_v22 = vmax.f32 %v1185_v19, %v1204_v20  ;;  %v528_v23 = vpop.f32.mrb[5].mxu0  ;;  %v611_v24 = vpop.f32.mrb[5].mxu1 }
 0x2c4   :  { %v620_v25 = vmax.f32 %v528_v23, %v611_v24 }
 0x2c5   :  { %v630_v26 = vadd.f32 %v944_v21, %v621_v22 }
 0x2c6   :  { %v629_v27 = vadd.f32 %v944_v21, %v620_v25 }
 0x2c7   :  { %v632_v31 = vmax.f32 %v630_v26, 0.0 }
 0x2c8   :  { %v631_v30 = vmax.f32 %v629_v27, 0.0 }
 0x2ca   :  { %1221 = vmatprep.mubr.msk.f32.mxu0 %vm270_vm0, %v631_v30  ;;  %1240 = vmatprep.mubr.msk.f32.mxu1 %vm270_vm0, %v631_v30 }
 0x2cb   :  { %1222 = vmatmul.mubr.msk.f32.vlgmr.msra.gmra.mrb[6].mxu0 %vm270_vm0, %v632_v31  ;;  %1241 = vmatmul.mubr.msk.f32.vlgmr.msra.gmra.mrb[6].mxu1 %vm270_vm0, %v632_v31 }
 0x2cc   :  { %1425 = vmatpush3.bf16.msra.mxu0 %v1422_v18 }
 0x2cd   :  { %1427 = vmatprep.subr.bf16.mxu0 %v1426_v32 }
 0x2d0   :  { %1429 = vmatpush3.bf16.msra.mxu0 %v1426_v32 }
 0x2d1   :  { %1431 = vmatprep.subr.bf16.mxu0 %v1430_v35 }
 0x2d4   :  { %1433 = vmatpush3.bf16.msra.mxu0 %v1430_v35 }
 0x2d5   :  { %1435 = vmatprep.subr.bf16.mxu0 %v1434_v38 }
 0x2d8   :  { %1437 = vmatpush3.bf16.msra.mxu0 %v1434_v38 }
 0x39e   :  { %v1223_v39 = vpop.f32.mrb[6].mxu0  ;;  %v1242_v40 = vpop.f32.mrb[6].mxu1 }
 0x39f   :  { %v806_v42 = vmax.f32 %v1223_v39, %v1242_v40  ;;  %v713_v43 = vpop.f32.mrb[7].mxu0  ;;  %v796_v44 = vpop.f32.mrb[7].mxu1 }
 0x3a0   :  { %v805_v45 = vmax.f32 %v713_v43, %v796_v44 }
 0x3a1   :  { %v815_v46 = vadd.f32 %v949_v41, %v806_v42 }
 0x3a2   :  { %v814_v47 = vadd.f32 %v949_v41, %v805_v45 }
 0x3a3   :  { %v817_v49 = vmax.f32 %v815_v46, 0.0 }
 0x3a4   :  { %v816_v48 = vmax.f32 %v814_v47, 0.0 }
 0x3a6   :  { %1259 = vmatprep.mubr.msk.f32.mxu0 %vm270_vm0, %v816_v48 }
 0x3a7   :  { %1260 = vmatmul.mubr.msk.f32.vlgmr.msra.gmra.mrb[8].mxu0 %vm270_vm0, %v817_v49 }
 0x47a   :  { %v1261_v51 = vpop.f32.mrb[8].mxu0 }
 0x47b   :  { %v911_v52 = vadd.f32 %v1261_v51, %v950_v50  ;;  %v905_v53 = vpop.f32.mrb[9].mxu0 }
 0x47c   :  { %v906_v54 = vadd.f32 %v950_v50, %v905_v53 }
 0x47d   :  { %916 = vst.msk [vmem:[#allocation5 + $0x8] sm:$0xff] %vm914_vm1, %v911_v52 }
 0x47e   :  { %915 = vst.msk [vmem:[#allocation5] sm:$0xff] %vm914_vm1, %v906_v54 }
 0x47f   :  { %1475 = shalt.err (!%p1472_p12)
}
 0x480   :  { %s1476_s14 = scalar_lea.hbm %s1912_s15, 256 }
 0x481   :  { %p1477_p13 = scmp.ne.s32.totalorder %s1912_s15, %s1476_s14  ;;  %p1480_p0 = scmp.lt.u32.totalorder %s1476_s14, %s1912_s15 }
 0x483   :  { %p1482_p1 = pnand %p1480_p0, %p1477_p13 }
 0x485   :  { %1485 = shalt.err (!%p1482_p1)
}
 0x486   :  { %928 = dma.vmem_to_hbm [thread:$0]  %s923_s26, 256, %s1912_s15, [#allocation4], %s1491_s28, %s1491_s28, %s1492_s29  }
 0x487   :  { %1488 = dma.done.wait [#allocation4], 256  }
 0x488   :  { %1489 = vsyncadd [#allocation4], 4294967040 }
 0x489   :  { %932 = vsyncpa [#allocation3], 1 }
 0x48a   :  { %933 = vsyncpa [#allocation4], 1 }

</bundles_post_ra>
